<compile_context>
chip_gen: v6e
topology: v6e:2x2x1
jax: 0.10.0
libtpu: 0.0.40
codegen_flags: <defaults>
</compile_context>

<pallas_src>
import jax
import jax.numpy as jnp
from jax.experimental import pallas as pl
from jax.experimental.pallas import tpu as pltpu


def _round_up(x, m):
    return ((x + m - 1) // m) * m


def _cdiv(a, b):
    return (a + b - 1) // b


# --------------------------------------------------------------------------- #
# Kernels.  Grid = (token tiles [parallel], hidden-dim slices [arbitrary]).
#   x_ref : (tm, E)   token tile (block index constant across k -> fetched once per i)
#   w1_ref: (E, th)   slice of W1 columns  (th == H  =>  resident, fetched once)
#   b1_ref: (1, th)   matching slice of b1
#   w2_ref: (th, E)   slice of W2 rows
#   b2_ref: (1, E)
#   o_ref : (tm, E)   output tile, resident in VMEM across the k axis
# --------------------------------------------------------------------------- #
def _ffn_kernel_f32out(x_ref, w1_ref, b1_ref, w2_ref, b2_ref, o_ref):
    """float32 output: accumulate straight into o_ref (no scratch copy)."""
    k = pl.program_id(1)

    @pl.when(k == 0)
    def _():
        o_ref[...] = jnp.zeros_like(o_ref)

    h = jnp.dot(x_ref[...], w1_ref[...], preferred_element_type=jnp.float32)
    h = jnp.maximum(h + b1_ref[...], 0.0)            # bias + ReLU fused, f32
    o_ref[...] += jnp.dot(h.astype(w2_ref.dtype), w2_ref[...],
                          preferred_element_type=jnp.float32)

    @pl.when(k == pl.num_programs(1) - 1)
    def _():
        o_ref[...] += b2_ref[...]


def _ffn_kernel_acc(x_ref, w1_ref, b1_ref, w2_ref, b2_ref, o_ref, acc_ref):
    """Non-f32 output: f32 VMEM accumulator, cast once on the last hidden slice."""
    k = pl.program_id(1)

    @pl.when(k == 0)
    def _():
        acc_ref[...] = jnp.zeros_like(acc_ref)

    h = jnp.dot(x_ref[...], w1_ref[...], preferred_element_type=jnp.float32)
    h = jnp.maximum(h + b1_ref[...], 0.0)
    acc_ref[...] += jnp.dot(h.astype(w2_ref.dtype), w2_ref[...],
                            preferred_element_type=jnp.float32)

    @pl.when(k == pl.num_programs(1) - 1)
    def _():
        o_ref[...] = (acc_ref[...] + b2_ref[...]).astype(o_ref.dtype)


# --------------------------------------------------------------------------- #
# Tile planning.
# --------------------------------------------------------------------------- #
def _vmem_capacity_bytes():
    try:
        return int(pltpu.get_tpu_info().vmem_capacity_bytes)
    except Exception:
        return 64 * 2**20                      # assume the smallest (v7x) VMEM


def _choose_tm(M, tm_target, want_two_tiles):
    if M <= 128:                               # tiny inputs: one minimally padded tile
        return _round_up(M, 8)
    tm = min(tm_target, _round_up(M, 128))     # tm stays a multiple of 128
    if want_two_tiles:                         # v7x: 2 TensorCores share "parallel" axis
        tm = min(tm, max(128, _round_up(_cdiv(M, 2), 128)))
    return max(128, (tm // 128) * 128)


def _vmem_estimate(tm, E, H, th, x_bytes, out_bytes, w_bytes, resident, use_acc):
    # Weight buffers (count 2x: the pipeline double-buffers inputs).
    if resident:
        w_vmem = 2 * ((E * H + H * E) * w_bytes + (H + E) * 4)
    else:
        w_vmem = 2 * ((E * th + th * E) * w_bytes + th * 4 + E * 4)
    io_vmem = 2 * tm * E * (x_bytes + out_bytes)          # double-buffered x / out
    acc_vmem = tm * E * 4 if use_acc else 0
    h_vmem = tm * th * (4 + w_bytes)                      # f32 intermediate + its cast
    return w_vmem + io_vmem + acc_vmem + h_vmem


def _choose_th(E, H, tm, x_bytes, out_bytes, w_bytes, use_acc, budget, th_user):
    def fits(th, resident):
        return _vmem_estimate(tm, E, H, th, x_bytes, out_bytes, w_bytes,
                              resident, use_acc) <= budget

    if th_user is not None and 0 < th_user <= H and H % th_user == 0:
        return th_user, th_user == H

    # Resident weights: W1/W2 DMA'd once per kernel call instead of per token tile.
    if fits(H, True):
        return H, True

    # Streamed weights: largest 128-multiple divisor of H that fits the budget.
    for cand in (1024, 896, 768, 640, 512, 384, 256, 128):
        if cand <= H and H % cand == 0 and fits(cand, False):
            return cand, False

    # Last resort: smallest 128-multiple divisor; full H only for ragged sizes.
    # TODO(synk): ragged H (no 128-multiple divisor) with huge weights would need
    # in-kernel masking; H = 4*E is a multiple of 128 for every practical E.
    for cand in (128, 256, 384, 512):
        if cand <= H and H % cand == 0:
            return cand, False
    return H, True


def _plan(M, E, H, x_bytes, out_bytes, w_bytes, use_acc, vmem_cap, tm_user, th_user):
    budget = max(vmem_cap - 16 * 2**20, 24 * 2**20)       # Mosaic-scratch headroom
    want_two = vmem_cap < 96 * 2**20                      # 64-MiB chips = v7x (2 TC)
    tm_target = tm_user if tm_user is not None else (
        1024 if vmem_cap >= 96 * 2**20 else 512)
    tm = _choose_tm(M, tm_target, want_two)
    while True:
        th, resident = _choose_th(E, H, tm, x_bytes, out_bytes, w_bytes,
                                  use_acc, budget, th_user)
        est = _vmem_estimate(tm, E, H, th, x_bytes, out_bytes, w_bytes,
                             resident, use_acc)
        if est <= budget or tm <= 128:
            return tm, th, resident, est
        tm = max(128, tm // 2)                            # shrink token tile if needed


# --------------------------------------------------------------------------- #
# Public wrapper.
# --------------------------------------------------------------------------- #
def feed_forward(x, w1, b1, w2, b2, *, tm=None, th=None, compute_dtype=jnp.bfloat16):
    """Fused FeedForward: y = relu(x @ w1 + b1) @ w2 + b2.

    x : (M, E) tokens x embed.    w1: (E, H) (PyTorch weight transposed).
    b1: (H,)                      w2: (H, E)      b2: (E,)
    compute_dtype: matmul-operand dtype (default bf16 -> MXU-native on all
        generations); accumulation, bias add and ReLU stay in f32.  Pass None
        to keep the input dtype (strict f32 numerics).
    """
    M, E = x.shape
    H = w1.shape[1]
    out_dtype = x.dtype
    use_acc = out_dtype != jnp.float32

    if compute_dtype is not None:
        x = x.astype(compute_dtype)
        w1 = w1.astype(compute_dtype)
        w2 = w2.astype(compute_dtype)
    b1 = b1.astype(jnp.float32)
    b2 = b2.astype(jnp.float32)

    x_bytes = jnp.dtype(x.dtype).itemsize
    w_bytes = jnp.dtype(w1.dtype).itemsize
    out_bytes = jnp.dtype(out_dtype).itemsize

    vmem_cap = _vmem_capacity_bytes()
    tm, th, resident, vmem_est = _plan(M, E, H, x_bytes, out_bytes, w_bytes,
                                       use_acc, vmem_cap, tm, th)

    # Only the activations are (cheaply) row-padded; W1/W2/b1 are never copied.
    M_p = _round_up(M, tm)
    if M_p != M:
        x = jnp.pad(x, ((0, M_p - M), (0, 0)))

    b1_2d = b1.reshape(1, H)
    b2_2d = b2.reshape(1, E)

    n_tok_tiles = M_p // tm
    grid = (n_tok_tiles, H // th)

    vmem_limit = int(min(vmem_cap - 8 * 2**20,
                         max(32 * 2**20, 1.4 * vmem_est + 4 * 2**20)))

    weight_reads = 1 if resident else n_tok_tiles
    cost = pl.CostEstimate(
        flops=4 * M * E * H,                               # two GEMMs: 2*M*E*H each
        transcendentals=0,
        bytes_accessed=(M_p * E * (x_bytes + out_bytes)    # x in + y out
                        + weight_reads * 2 * E * H * w_bytes
                        + H * 4 + E * 4),                  # biases
    )

    kernel = _ffn_kernel_acc if use_acc else _ffn_kernel_f32out
    scratch = [pltpu.VMEM((tm, E), jnp.float32)] if use_acc else []

    out = pl.pallas_call(
        kernel,
        out_shape=jax.ShapeDtypeStruct((M_p, E), out_dtype),
        grid_spec=pltpu.PrefetchScalarGridSpec(
            num_scalar_prefetch=0,
            grid=grid,
            in_specs=[
                pl.BlockSpec((tm, E), lambda i, k: (i, 0)),   # x tile
                pl.BlockSpec((E, th), lambda i, k: (0, k)),   # W1 slice (or resident)
                pl.BlockSpec((1, th), lambda i, k: (0, k)),   # b1 slice
                pl.BlockSpec((th, E), lambda i, k: (k, 0)),   # W2 slice (or resident)
                pl.BlockSpec((1, E), lambda i, k: (0, 0)),    # b2
            ],
            out_specs=pl.BlockSpec((tm, E), lambda i, k: (i, 0)),
            scratch_shapes=scratch,
        ),
        compiler_params=pltpu.CompilerParams(
            dimension_semantics=("parallel", "arbitrary"),
            vmem_limit_bytes=vmem_limit),
        cost_estimate=cost,
    )(x, w1, b1_2d, w2, b2_2d)

    return out[:M] if M_p != M else out


if __name__ == "__main__":
    # Shapes consistent with the module: batch=2, seq=8, embed=32 (H = 4*E = 128).
    B, S, E = 2, 8, 32
    H = 4 * E

    key = jax.random.PRNGKey(0)
    kx, kw1, kb1, kw2, kb2 = jax.random.split(key, 5)

    x = jax.random.normal(kx, (B, S, E), dtype=jnp.float32)
    # PyTorch Linear stores (out, in); we keep the (in, out) transpose.
    w1 = jax.random.normal(kw1, (E, H), dtype=jnp.float32) * 0.05
    b1 = jax.random.normal(kb1, (H,), dtype=jnp.float32) * 0.01
    w2 = jax.random.normal(kw2, (H, E), dtype=jnp.float32) * 0.05
    b2 = jax.random.normal(kb2, (E,), dtype=jnp.float32) * 0.01

    x2d = x.reshape(B * S, E)
    ref = jnp.maximum(x2d @ w1 + b1, 0.0) @ w2 + b2

    # 1) Default path: bf16 matmul operands, f32 accumulation, f32 output.
    out_bf = jax.block_until_ready(feed_forward(x2d, w1, b1, w2, b2))
    assert out_bf.shape == (B * S, E) and out_bf.dtype == jnp.float32
    assert jnp.allclose(out_bf, ref, atol=2e-2, rtol=2e-2), "bf16 path mismatch"

    # 2) Strict f32 path (tight tolerance).
    out_f32 = jax.block_until_ready(
        feed_forward(x2d, w1, b1, w2, b2, compute_dtype=None))
    assert jnp.allclose(out_f32, ref, atol=1e-4, rtol=1e-4), "f32 path mismatch"

    # 3) Streamed-weights + padded-token-tile path (M not a tile multiple, th < H).
    M2, E2 = 300, 128
    H2 = 4 * E2
    k2 = jax.random.split(jax.random.PRNGKey(0), 5)
    x2 = jax.random.normal(k2[0], (M2, E2), dtype=jnp.float32)
    w1b = jax.random.normal(k2[1], (E2, H2), dtype=jnp.float32) * 0.05
    b1b = jax.random.normal(k2[2], (H2,), dtype=jnp.float32) * 0.01
    w2b = jax.random.normal(k2[3], (H2, E2), dtype=jnp.float32) * 0.05
    b2b = jax.random.normal(k2[4], (E2,), dtype=jnp.float32) * 0.01
    ref2 = jnp.maximum(x2 @ w1b + b1b, 0.0) @ w2b + b2b
    out2 = jax.block_until_ready(
        feed_forward(x2, w1b, b1b, w2b, b2b, compute_dtype=None, th=128))
    assert out2.shape == (M2, E2)
    assert jnp.allclose(out2, ref2, atol=1e-3, rtol=1e-3), "streamed path mismatch"

    # 4) bf16 input/output path (exercises the f32 scratch-accumulator kernel).
    out_b16 = jax.block_until_ready(
        feed_forward(x2d.astype(jnp.bfloat16), w1, b1, w2, b2))
    assert out_b16.dtype == jnp.bfloat16
    assert jnp.allclose(out_b16.astype(jnp.float32), ref, atol=3e-2, rtol=3e-2), \
        "bf16-output path mismatch"

    print("KERNEL_OK")
</pallas_src>

<mosaic_0001>
module attributes {stable_mosaic.version = 11 : i64} {
  func.func @_ffn_kernel_f32out(%arg0: i32, %arg1: i32, %arg2: memref<16x32xbf16, #tpu.memory_space<vmem>>, %arg3: memref<32x128xbf16, #tpu.memory_space<vmem>>, %arg4: memref<1x128xf32, #tpu.memory_space<vmem>>, %arg5: memref<128x32xbf16, #tpu.memory_space<vmem>>, %arg6: memref<1x32xf32, #tpu.memory_space<vmem>>, %arg7: memref<16x32xf32, #tpu.memory_space<vmem>>) attributes {dimension_semantics = [#tpu.dimension_semantics<parallel>, #tpu.dimension_semantics<arbitrary>], iteration_bounds = array<i64: 1, 1>, scalar_prefetch = 0 : i64, scratch_operands = 0 : i64, tpu.core_type = #tpu.core_type<tc>, window_params = [{transform_indices = @transform_0, window_bounds = array<i64: 16, 32>}, {transform_indices = @transform_1, window_bounds = array<i64: 32, 128>}, {transform_indices = @transform_2, window_bounds = array<i64: 1, 128>}, {transform_indices = @transform_3, window_bounds = array<i64: 128, 32>}, {pipeline_mode = #tpu.pipeline_mode<synchronous>, transform_indices = @transform_4, window_bounds = array<i64: 1, 32>}, {transform_indices = @transform_5, window_bounds = array<i64: 16, 32>}]} {
    %c0_i32 = arith.constant 0 : i32
    %0 = arith.cmpi eq, %arg1, %c0_i32 : i32
    %1 = arith.extui %0 : i1 to i32
    %c0_i32_0 = arith.constant 0 : i32
    %2 = arith.cmpi ne, %1, %c0_i32_0 : i32
    scf.if %2 {
      %cst_16 = arith.constant 0.000000e+00 : f32
      %20 = vector.broadcast %cst_16 : f32 to vector<16x32xf32>
      %c0_17 = arith.constant 0 : index
      %c0_18 = arith.constant 0 : index
      %21 = vector.load %arg7[%c0_17, %c0_18] : memref<16x32xf32, #tpu.memory_space<vmem>>, vector<16x32xf32>
      tpu.vector_store %arg7[%c0_17, %c0_18], %20 {strides = array<i32>} : memref<16x32xf32, #tpu.memory_space<vmem>>, vector<16x32xf32>,
    } else {
    }
    %c0 = arith.constant 0 : index
    %c0_1 = arith.constant 0 : index
    %3 = vector.load %arg2[%c0, %c0_1] : memref<16x32xbf16, #tpu.memory_space<vmem>>, vector<16x32xbf16>
    %c0_2 = arith.constant 0 : index
    %c0_3 = arith.constant 0 : index
    %4 = vector.load %arg3[%c0_2, %c0_3] : memref<32x128xbf16, #tpu.memory_space<vmem>>, vector<32x128xbf16>
    %cst = arith.constant dense<0.000000e+00> : vector<16x128xf32>
    %5 = tpu.matmul %3, %4, %cst {dimension_numbers = #tpu.dot_dimension_numbers<[1], [0], [0], [1], [0, 0, 1, 1], [], []>} : vector<16x32xbf16>, vector<32x128xbf16>, vector<16x128xf32> -> vector<16x128xf32>
    %c0_4 = arith.constant 0 : index
    %c0_5 = arith.constant 0 : index
    %6 = vector.load %arg4[%c0_4, %c0_5] : memref<1x128xf32, #tpu.memory_space<vmem>>, vector<1x128xf32>
    %7 = vector.broadcast %6 : vector<1x128xf32> to vector<16x128xf32>
    %8 = arith.addf %5, %7 : vector<16x128xf32>
    %cst_6 = arith.constant 0.000000e+00 : f32
    %9 = vector.broadcast %cst_6 : f32 to vector<16x128xf32>
    %10 = arith.maximumf %8, %9 : vector<16x128xf32>
    %c0_7 = arith.constant 0 : index
    %c0_8 = arith.constant 0 : index
    %11 = vector.load %arg7[%c0_7, %c0_8] : memref<16x32xf32, #tpu.memory_space<vmem>>, vector<16x32xf32>
    %12 = arith.truncf %10 : vector<16x128xf32> to vector<16x128xbf16>
    %c0_9 = arith.constant 0 : index
    %c0_10 = arith.constant 0 : index
    %13 = vector.load %arg5[%c0_9, %c0_10] : memref<128x32xbf16, #tpu.memory_space<vmem>>, vector<128x32xbf16>
    %cst_11 = arith.constant dense<0.000000e+00> : vector<16x32xf32>
    %14 = tpu.matmul %12, %13, %cst_11 {dimension_numbers = #tpu.dot_dimension_numbers<[1], [0], [0], [1], [0, 0, 1, 1], [], []>} : vector<16x128xbf16>, vector<128x32xbf16>, vector<16x32xf32> -> vector<16x32xf32>
    %15 = arith.addf %11, %14 : vector<16x32xf32>
    %c0_12 = arith.constant 0 : index
    %c0_13 = arith.constant 0 : index
    %16 = vector.load %arg7[%c0_12, %c0_13] : memref<16x32xf32, #tpu.memory_space<vmem>>, vector<16x32xf32>
    tpu.vector_store %arg7[%c0_12, %c0_13], %15 {strides = array<i32>} : memref<16x32xf32, #tpu.memory_space<vmem>>, vector<16x32xf32>,
    %c0_i32_14 = arith.constant 0 : i32
    %17 = arith.cmpi eq, %arg1, %c0_i32_14 : i32
    %18 = arith.extui %17 : i1 to i32
    %c0_i32_15 = arith.constant 0 : i32
    %19 = arith.cmpi ne, %18, %c0_i32_15 : i32
    scf.if %19 {
      %c0_16 = arith.constant 0 : index
      %c0_17 = arith.constant 0 : index
      %20 = vector.load %arg7[%c0_16, %c0_17] : memref<16x32xf32, #tpu.memory_space<vmem>>, vector<16x32xf32>
      %c0_18 = arith.constant 0 : index
      %c0_19 = arith.constant 0 : index
      %21 = vector.load %arg6[%c0_18, %c0_19] : memref<1x32xf32, #tpu.memory_space<vmem>>, vector<1x32xf32>
      %22 = vector.broadcast %21 : vector<1x32xf32> to vector<16x32xf32>
      %23 = arith.addf %20, %22 : vector<16x32xf32>
      %c0_20 = arith.constant 0 : index
      %c0_21 = arith.constant 0 : index
      %24 = vector.load %arg7[%c0_20, %c0_21] : memref<16x32xf32, #tpu.memory_space<vmem>>, vector<16x32xf32>
      tpu.vector_store %arg7[%c0_20, %c0_21], %23 {strides = array<i32>} : memref<16x32xf32, #tpu.memory_space<vmem>>, vector<16x32xf32>,
    } else {
    }
    return
  }
  func.func @transform_0(%arg0: i32, %arg1: i32) -> (i32, i32) {
    %c0_i32 = arith.constant 0 : i32
    %c0_i32_0 = arith.constant 0 : i32
    return %arg0, %c0_i32 : i32, i32
  }
  func.func @transform_1(%arg0: i32, %arg1: i32) -> (i32, i32) {
    %c0_i32 = arith.constant 0 : i32
    %c0_i32_0 = arith.constant 0 : i32
    return %c0_i32, %arg1 : i32, i32
  }
  func.func @transform_2(%arg0: i32, %arg1: i32) -> (i32, i32) {
    %c0_i32 = arith.constant 0 : i32
    %c0_i32_0 = arith.constant 0 : i32
    return %c0_i32, %arg1 : i32, i32
  }
  func.func @transform_3(%arg0: i32, %arg1: i32) -> (i32, i32) {
    %c0_i32 = arith.constant 0 : i32
    %c0_i32_0 = arith.constant 0 : i32
    return %arg1, %c0_i32 : i32, i32
  }
  func.func @transform_4(%arg0: i32, %arg1: i32) -> (i32, i32) {
    %c0_i32 = arith.constant 0 : i32
    %c0_i32_0 = arith.constant 0 : i32
    %c0_i32_1 = arith.constant 0 : i32
    return %c0_i32, %c0_i32_0 : i32, i32
  }
  func.func @transform_5(%arg0: i32, %arg1: i32) -> (i32, i32) {
    %c0_i32 = arith.constant 0 : i32
    %c0_i32_0 = arith.constant 0 : i32
    return %arg0, %c0_i32 : i32, i32
  }
}

</mosaic_0001>

<bundles_post_ra>
// kernel: tpu_custom_call.1
= control target key start
LH: loop header
LB: loop body
LE: loop exit
PB: predicated region body
PF: predicated region fallthrough
CT: control target
= control target key end

     0   :  { %v342_v1 = vmov 0.0   ;;  %vm343_vm0 = vmmov 0   ;;  %vm26_vm1 = vcmask 261120   ;;  %s426_s0 = inlined_call_operand.vmem [shape: bf16[16,32], index: 0, kind: input, shape index: {}]   ;;  %s427_s1 = inlined_call_operand.vmem [shape: bf16[32,128], index: 1, kind: input, shape index: {}]   ;;  %s428_s2 = inlined_call_operand.vmem [shape: f32[1,128], index: 2, kind: input, shape index: {}]   ;;  %s429_s3 = inlined_call_operand.vmem [shape: bf16[128,32], index: 3, kind: input, shape index: {}]   ;;  %s430_s4 = inlined_call_operand.vmem [shape: f32[1,32], index: 4, kind: input, shape index: {}]   ;;  %s431_s5 = inlined_call_operand.hbm [shape: f32[16,32], index: 5, kind: output, shape index: {}]  }
   0x1   :  { %v309_v0 = vld [vmem:[%s427_s1 + $0x8] sm:$0xff]   ;;  %276 = vmatprep.subr.bf16.mxu0 %v342_v1  ;;  %284 = vmatprep.subr.bf16.mxu1 %v342_v1  ;;  %v310_v2 = vld [vmem:[%s427_s1] sm:$0xff]   ;;  %27 = vst.msk [vmem:[#allocation2] sm:$0xff] %vm26_vm1, %v342_v1  ;;  %28 = vst.msk [vmem:[#allocation2 + $0x8] sm:$0xff] %vm26_vm1, %v342_v1 }
   0x2   :  { %277 = vmatpush3.bf16.msra.mxu0 %v309_v0  ;;  %280 = vmatprep.mubr.msk.bf16.mxu0 %vm343_vm0, %v342_v1  ;;  %v312_v3 = vld [vmem:[%s429_s3 + $0x38] sm:$0xff]   ;;  %v311_v4 = vld [vmem:[%s426_s0] sm:$0xff]   ;;  %v313_v5 = vld [vmem:[%s429_s3 + $0x30] sm:$0xff]  }
   0x3   :  { %278 = vmatprep.subr.bf16.mxu0 %v342_v1  ;;  %300 = vmatprep.mubr.msk.bf16.mxu1 %vm343_vm0, %v342_v1  ;;  %v314_v6 = vld [vmem:[%s429_s3 + $0x28] sm:$0xff]  }
   0x4   :  { %285 = vmatpush3.bf16.msra.mxu1 %v312_v3 }
   0x5   :  { %286 = vmatprep.subr.bf16.mxu1 %v342_v1 }
   0x6   :  { %279 = vmatpush3.bf16.msra.mxu0 %v310_v2 }
   0x8   :  { %287 = vmatpush3.bf16.msra.mxu1 %v313_v5 }
   0x9   :  { %281 = vmatmul.mubr.msk.bf16.vlgmr.msra.gmra.mxu0 %vm26_vm1, %v311_v4  ;;  %288 = vmatprep.subr.bf16.mxu1 %v342_v1 }
   0xa   :  { %10 = vsyncpa [#allocation3], 0  ;;  %v315_v7 = vld [vmem:[%s429_s3 + $0x20] sm:$0xff]   ;;  %v316_v8 = vld [vmem:[%s429_s3 + $0x18] sm:$0xff]   ;;  %s344_s15 = smov [#allocation2]  }
   0xb   :  { %v317_v9 = vld [vmem:[%s429_s3 + $0x10] sm:$0xff]   ;;  %v318_v10 = vld [vmem:[%s429_s3 + $0x8] sm:$0xff]   ;;  %v319_v11 = vld [vmem:[%s429_s3] sm:$0xff]   ;;  %s239_s16 = sshll.u32 %s344_s15, 4  ;;  %s240_s16 = int_to_ptr.vmem [resolvable:$true] %s239_s16 }
   0xc   :  { %289 = vmatpush3.bf16.msra.mxu1 %v314_v6  ;;  %v250_v12 = vld [vmem:[%s428_s2] ss:$0 sm:$0xff]  ;;  %v107_v26 = vld [vmem:[#allocation2 + $0x8] sm:$0xff]  ;;  %s320_s17 = scalar_lea.vmem %s240_s16, 256  ;;  %p325_p1 = scmp.lt.s32.totalorder %s240_s16, %s240_s16 }
   0xd   :  { %290 = vmatprep.subr.bf16.mxu1 %v342_v1  ;;  %v106_v22 = vld [vmem:[#allocation2] sm:$0xff]  ;;  %p321_p0 = scmp.ne.s32.totalorder %s240_s16, %s320_s17  ;;  %p326_p2 = scmp.lt.s32.totalorder %s320_s17, %s320_s17 }
   0xe   :  { %v263_v30 = vld [vmem:[%s430_s4] ss:$0 sm:$0xff] }
   0xf   :  { %p327_p3 = por %p326_p2, %p325_p1 }
  0x10   :  { %291 = vmatpush3.bf16.msra.mxu1 %v315_v7 }
  0x11   :  { %292 = vmatprep.subr.bf16.mxu1 %v342_v1  ;;  %p328_p4 = pnand %p327_p3, %p321_p0 }
  0x14   :  { %293 = vmatpush3.bf16.msra.mxu1 %v316_v8 }
  0x15   :  { %294 = vmatprep.subr.bf16.mxu1 %v342_v1 }
  0x18   :  { %295 = vmatpush3.bf16.msra.mxu1 %v317_v9 }
  0x19   :  { %296 = vmatprep.subr.bf16.mxu1 %v342_v1 }
  0x1c   :  { %297 = vmatpush3.bf16.msra.mxu1 %v318_v10 }
  0x1d   :  { %298 = vmatprep.subr.bf16.mxu1 %v342_v1 }
  0x20   :  { %299 = vmatpush3.bf16.msra.mxu1 %v319_v11 }
  0xc9   :  { %v97_v13 = vpop.f32.mrf.mxu0 }
  0xca   :  { %v98_v15 = vadd.f32 %v250_v12, %v97_v13 }
  0xcb   :  { %v282_v14 = vpop.f32.mrf.mxu0 }
  0xcc   :  { %v104_v19 = vmax.f32 %v98_v15, 0.0 }
  0xcd   :  { %v100_v16 = vpop.f32.mrf.mxu0 }
  0xce   :  { %v101_v17 = vadd.f32 %v250_v12, %v100_v16 }
  0xcf   :  { %v283_v18 = vpop.f32.mrf.mxu0 }
  0xd0   :  { %v105_v20 = vmax.f32 %v101_v17, 0.0 }
  0xd2   :  { %v108_v21 = vpack.c.bf16 %v105_v20, %v104_v19 }
  0xd4   :  { %301 = vmatmul.mubr.bf16.vlgmr.msra.gmra.mxu1 %v108_v21 }
 0x194   :  { %v207_v23 = vpop.f32.mrf.mxu1 }
 0x195   :  { %v214_v24 = vadd.f32 %v207_v23, %v106_v22 }
 0x196   :  { %v302_v25 = vpop.f32.mrf.mxu1 }
 0x197   :  { %216 = vst.msk [vmem:[#allocation2] sm:$0xff] %vm26_vm1, %v214_v24 }
 0x198   :  { %v210_v27 = vpop.f32.mrf.mxu1 }
 0x199   :  { %v215_v28 = vadd.f32 %v210_v27, %v107_v26 }
 0x19a   :  { %v303_v29 = vpop.f32.mrf.mxu1 }
 0x19b   :  { %217 = vst.msk [vmem:[#allocation2 + $0x8] sm:$0xff] %vm26_vm1, %v215_v28 }
 0x19e   :  { %v221_v31 = vld [vmem:[#allocation2] sm:$0xff] }
 0x19f   :  { %v230_v32 = vadd.f32 %v263_v30, %v221_v31 }
 0x1a1   :  { %232 = vst.msk [vmem:[#allocation2] sm:$0xff] %vm26_vm1, %v230_v32 }
 0x1a2   :  { %v222_v33 = vld [vmem:[#allocation2 + $0x8] sm:$0xff] }
 0x1a3   :  { %v231_v34 = vadd.f32 %v263_v30, %v222_v33 }
 0x1a5   :  { %233 = vst.msk [vmem:[#allocation2 + $0x8] sm:$0xff] %vm26_vm1, %v231_v34 }
 0x1a6   :  { %331 = shalt.err (!%p328_p4)
}
 0x1a7   :  { %s345_s18 = smov 128   ;;  %s346_s4 = smov 8  }
 0x1a8   :  { %245 = dma.vmem_to_hbm [thread:$0]  %s240_s16, 256, %s431_s5, [#allocation3], %s345_s18, %s345_s18, %s346_s4  }
 0x1a9   :  { %340 = dma.done.wait [#allocation3], 256  }
 0x1aa   :  { %341 = vsyncadd [#allocation3], 4294967040 }
 0x1ab   :  { %249 = vsyncpa [#allocation3], 1 }

</bundles_post_ra>
